<compile_context>
chip_gen: v7x
topology: tpu7x:2x2x1
jax: 0.10.0
libtpu: 0.0.40
codegen_flags: <defaults>
</compile_context>

<pallas_src>
import math

import jax
import jax.numpy as jnp
from jax.experimental import pallas as pl
from jax.experimental.pallas import tpu as pltpu


def _bilinear_matrix(n_out: int, n_in: int):
    """f32 interpolation matrix for bilinear upsampling with align_corners=True,
    i.e. the semantics of nn.UpsamplingBilinear2d."""
    if n_out == 1 or n_in == 1:
        src = jnp.zeros((n_out,), dtype=jnp.float32)
    else:
        src = jnp.arange(n_out, dtype=jnp.float32) * ((n_in - 1) / (n_out - 1))
    i0 = jnp.clip(jnp.floor(src).astype(jnp.int32), 0, n_in - 1)
    i1 = jnp.clip(i0 + 1, 0, n_in - 1)
    w1 = src - i0.astype(jnp.float32)
    w0 = 1.0 - w1
    rows = jnp.arange(n_out)
    m = jnp.zeros((n_out, n_in), dtype=jnp.float32)
    m = m.at[rows, i0].add(w0)
    m = m.at[rows, i1].add(w1)
    return m


def _pick_c_tile(c: int, in_cols: int, out_cols: int, itemsize: int,
                 const_bytes: int, budget: int = 24 << 20) -> int:
    """Largest 128-aligned channel tile dividing C whose double-buffered blocks
    (+ the resident weight matrix + f32 temporaries) stay under a conservative
    scoped-VMEM budget (safe on v5e/v6e/v7x defaults)."""
    for t in (512, 256, 128):
        if c % t == 0:
            io_bytes = 2 * t * (in_cols + out_cols) * itemsize   # dbl-buffered in+out
            tmp_bytes = t * (in_cols + out_cols) * 4             # in-kernel f32 temps
            if io_bytes + tmp_bytes + 2 * const_bytes <= budget:
                return t
    return c  # small / odd C: single block (full-dim blocks satisfy tiling rules)


def _token_upsample_kernel(x_ref, kt_ref, o_ref):
    # x_ref : (N, c_tile)  raw token slab (row 0 = CLS; kt_ref[0, :] == 0 drops it)
    # kt_ref: (N, TT)      f32 interpolation weights (constant index_map -> resident)
    # o_ref : (c_tile, TT) channels-first, spatially-flattened output (lane-dense)
    xt = x_ref[...].astype(jnp.float32).T          # small in-VMEM transpose (XLU)
    o_ref[...] = jnp.dot(xt, kt_ref[...],
                         preferred_element_type=jnp.float32).astype(o_ref.dtype)


def _nchw_upsample_kernel(x_ref, krt_ref, o_ref):
    # x_ref: (c_tile, H*W), krt_ref: (H*W, TT) f32, o_ref: (c_tile, TT)
    x = x_ref[...].astype(jnp.float32)
    o_ref[...] = jnp.dot(x, krt_ref[...],
                         preferred_element_type=jnp.float32).astype(o_ref.dtype)


def upsample_tokens_to_nchw(token, h_out: int, w_out: int):
    """(B, 1 + s*s, C) CLIP tokens -> (B, C, h_out, w_out) NCHW bilinear upsample."""
    B, N, C = token.shape
    s = int(round(math.sqrt(N - 1)))
    tt = h_out * w_out
    kron = jnp.kron(_bilinear_matrix(h_out, s), _bilinear_matrix(w_out, s))   # (tt, s*s)
    # zero first row absorbs the CLS token -> no host-side slicing/permuting
    kt = jnp.concatenate([jnp.zeros((1, tt), jnp.float32), kron.T], axis=0)   # (N, tt)

    itemsize = jnp.dtype(token.dtype).itemsize
    c_tile = _pick_c_tile(C, N, tt, itemsize, const_bytes=tt * N * 4)
    cost = pl.CostEstimate(
        flops=2 * B * C * N * tt,
        transcendentals=0,
        bytes_accessed=int(B * N * C * itemsize + B * C * tt * itemsize + tt * N * 4),
    )
    out = pl.pallas_call(
        _token_upsample_kernel,
        out_shape=jax.ShapeDtypeStruct((B, C, tt), token.dtype),
        grid_spec=pltpu.PrefetchScalarGridSpec(
            num_scalar_prefetch=0,
            grid=(B, C // c_tile),
            in_specs=[
                pl.BlockSpec((None, N, c_tile), lambda b, ci: (b, 0, ci)),
                pl.BlockSpec((N, tt), lambda b, ci: (0, 0)),
            ],
            out_specs=pl.BlockSpec((None, c_tile, tt), lambda b, ci: (b, ci, 0)),
        ),
        compiler_params=pltpu.CompilerParams(
            dimension_semantics=("parallel", "parallel")),
        cost_estimate=cost,
    )(token, kt)
    return out.reshape(B, C, h_out, w_out)


def upsample_nchw(x, h_out: int, w_out: int):
    """(B, C, H, W) -> (B, C, h_out, w_out) bilinear (align_corners=True) upsample."""
    B, C, H, W = x.shape
    hw = H * W
    tt = h_out * w_out
    krt = jnp.kron(_bilinear_matrix(h_out, H), _bilinear_matrix(w_out, W)).T  # (hw, tt)

    itemsize = jnp.dtype(x.dtype).itemsize
    c_tile = _pick_c_tile(C, hw, tt, itemsize, const_bytes=hw * tt * 4)
    cost = pl.CostEstimate(
        flops=2 * B * C * hw * tt,
        transcendentals=0,
        bytes_accessed=int(B * C * hw * itemsize + B * C * tt * itemsize + hw * tt * 4),
    )
    x_flat = x.reshape(B, C, hw)  # contiguous reshape, no data movement
    out = pl.pallas_call(
        _nchw_upsample_kernel,
        out_shape=jax.ShapeDtypeStruct((B, C, tt), x.dtype),
        grid_spec=pltpu.PrefetchScalarGridSpec(
            num_scalar_prefetch=0,
            grid=(B, C // c_tile),
            in_specs=[
                pl.BlockSpec((None, c_tile, hw), lambda b, ci: (b, ci, 0)),
                pl.BlockSpec((hw, tt), lambda b, ci: (0, 0)),
            ],
            out_specs=pl.BlockSpec((None, c_tile, tt), lambda b, ci: (b, ci, 0)),
        ),
        compiler_params=pltpu.CompilerParams(
            dimension_semantics=("parallel", "parallel")),
        cost_estimate=cost,
    )(x_flat, krt)
    return out.reshape(B, C, h_out, w_out)


class Necker:
    """JAX/Pallas port of models/Necker.py::Necker.

    Only `token_size` is consumed from the original clip_model; the bilinear
    upsamplers have no learnable parameters, so there is nothing to load.
    """

    def __init__(self, token_size):
        self.token_size = list(token_size)
        self.target = max(self.token_size)

    def __call__(self, tokens):
        align_features = []
        for i, token in enumerate(tokens):
            # nn.UpsamplingBilinear2d(scale_factor=sf): out = floor(in_spatial * sf)
            sf = self.target / self.token_size[i]
            if token.ndim == 3:
                B, N, C = token.shape
                s = int(round(math.sqrt(N - 1)))
                h_out = int(math.floor(s * sf))
                w_out = int(math.floor(s * sf))
                align_features.append(upsample_tokens_to_nchw(token, h_out, w_out))
            else:
                h_out = int(math.floor(token.shape[2] * sf))
                w_out = int(math.floor(token.shape[3] * sf))
                align_features.append(upsample_nchw(token, h_out, w_out))
        return align_features


if __name__ == "__main__":
    key = jax.random.PRNGKey(0)
    B, C = 2, 4
    token_size = [8, 4, 4]          # -> target = 8
    necker = Necker(token_size)
    target = max(token_size)

    tokens = []
    # two 3-D CLIP-style token slabs (B, 1 + s*s, C) with a leading CLS token
    for s in token_size[:2]:
        key, sub = jax.random.split(key)
        tokens.append(jax.random.normal(sub, (B, 1 + s * s, C), dtype=jnp.float32))
    # one 4-D NCHW feature map to exercise the second kernel path
    key, sub = jax.random.split(key)
    tokens.append(jax.random.normal(sub, (B, C, token_size[2], token_size[2]),
                                    dtype=jnp.float32))

    outs = necker(tokens)
    outs = [jax.block_until_ready(o) for o in outs]

    # Pure-JAX reference of the same math for a sanity check.
    for i, (tok, out) in enumerate(zip(tokens, outs)):
        s = token_size[i]
        if tok.ndim == 3:
            Bn, N, Cc = tok.shape
            x = tok[:, 1:, :].reshape(Bn, s, s, Cc).transpose(0, 3, 1, 2)
        else:
            x = tok
        sf = target / s
        h_out = int(math.floor(x.shape[2] * sf))
        w_out = int(math.floor(x.shape[3] * sf))
        mh = _bilinear_matrix(h_out, x.shape[2])
        mw = _bilinear_matrix(w_out, x.shape[3])
        ref = jnp.einsum("oh,bchw,kw->bcok", mh, x, mw,
                         precision=jax.lax.Precision.HIGHEST)
        assert out.shape == ref.shape, (out.shape, ref.shape)
        err = float(jnp.max(jnp.abs(out - ref)))
        assert err < 2e-4, err

    print("KERNEL_OK")
</pallas_src>

<mosaic_0001>
module attributes {stable_mosaic.version = 11 : i64} {
  func.func @_token_upsample_kernel(%arg0: i32, %arg1: i32, %arg2: memref<1x65x4xf32, #tpu.memory_space<vmem>>, %arg3: memref<65x64xf32, #tpu.memory_space<vmem>>, %arg4: memref<1x4x64xf32, #tpu.memory_space<vmem>>) attributes {dimension_semantics = [#tpu.dimension_semantics<parallel>, #tpu.dimension_semantics<parallel>], iteration_bounds = array<i64: 2, 1>, scalar_prefetch = 0 : i64, scratch_operands = 0 : i64, tpu.core_type = #tpu.core_type<tc>, window_params = [{transform_indices = @transform_0, window_bounds = array<i64: 1, 65, 4>}, {pipeline_mode = #tpu.pipeline_mode<synchronous>, transform_indices = @transform_1, window_bounds = array<i64: 65, 64>}, {transform_indices = @transform_2, window_bounds = array<i64: 1, 4, 64>}]} {
    %c0 = arith.constant 0 : index
    %c0_0 = arith.constant 0 : index
    %c0_1 = arith.constant 0 : index
    %0 = vector.load %arg2[%c0, %c0_0, %c0_1] : memref<1x65x4xf32, #tpu.memory_space<vmem>>, vector<1x65x4xf32>
    %1 = vector.shape_cast %0 : vector<1x65x4xf32> to vector<65x4xf32>
    %2 = tpu.transpose %1, [1, 0] : vector<65x4xf32> -> vector<4x65xf32>
    %c0_2 = arith.constant 0 : index
    %c0_3 = arith.constant 0 : index
    %3 = vector.load %arg3[%c0_2, %c0_3] : memref<65x64xf32, #tpu.memory_space<vmem>>, vector<65x64xf32>
    %cst = arith.constant dense<0.000000e+00> : vector<4x64xf32>
    %4 = tpu.matmul %2, %3, %cst {dimension_numbers = #tpu.dot_dimension_numbers<[1], [0], [0], [1], [0, 0, 1, 1], [], []>} : vector<4x65xf32>, vector<65x64xf32>, vector<4x64xf32> -> vector<4x64xf32>
    %c0_4 = arith.constant 0 : index
    %c0_5 = arith.constant 0 : index
    %c0_6 = arith.constant 0 : index
    %5 = vector.load %arg4[%c0_4, %c0_5, %c0_6] : memref<1x4x64xf32, #tpu.memory_space<vmem>>, vector<1x4x64xf32>
    %6 = vector.shape_cast %5 : vector<1x4x64xf32> to vector<4x64xf32>
    %7 = vector.shape_cast %4 : vector<4x64xf32> to vector<1x4x64xf32>
    tpu.vector_store %arg4[%c0_4, %c0_5, %c0_6], %7 {strides = array<i32>} : memref<1x4x64xf32, #tpu.memory_space<vmem>>, vector<1x4x64xf32>,
    return
  }
  func.func @transform_0(%arg0: i32, %arg1: i32) -> (i32, i32, i32) {
    %c0_i32 = arith.constant 0 : i32
    %c0_i32_0 = arith.constant 0 : i32
    return %arg0, %c0_i32, %arg1 : i32, i32, i32
  }
  func.func @transform_1(%arg0: i32, %arg1: i32) -> (i32, i32) {
    %c0_i32 = arith.constant 0 : i32
    %c0_i32_0 = arith.constant 0 : i32
    %c0_i32_1 = arith.constant 0 : i32
    return %c0_i32, %c0_i32_0 : i32, i32
  }
  func.func @transform_2(%arg0: i32, %arg1: i32) -> (i32, i32, i32) {
    %c0_i32 = arith.constant 0 : i32
    %c0_i32_0 = arith.constant 0 : i32
    return %arg0, %arg1, %c0_i32 : i32, i32, i32
  }
}

</mosaic_0001>

<bundles_post_ra>
// kernel: tpu_custom_call.1
= control target key start
LH: loop header
LB: loop body
LE: loop exit
PB: predicated region body
PF: predicated region fallthrough
CT: control target
= control target key end

     0   :  { %7 = vsyncpa [#allocation3], 0  ;;  %s739_s0 = inlined_call_operand.vmem [shape: f32[2,65,4], index: 0, kind: input, shape index: {}]   ;;  %s740_s1 = inlined_call_operand.vmem [shape: f32[65,64], index: 1, kind: input, shape index: {}]   ;;  %s741_s2 = inlined_call_operand.hbm [shape: f32[2,4,64], index: 2, kind: output, shape index: {}]  }
   0x1   :  { %9 = vsyncpa [#allocation3 + $0x1], 0  ;;  %s600_s9 = smov 0   ;;  %s602_s10 = smov 0  }
   0x2   :  { %s604_s11 = smov 0   ;;  %s606_s12 = smov 0  }
   0x3   :  { %s608_s13 = smov 0   ;;  %s610_s14 = smov 0  }
   0x4 LB: > { %s386_s15 = sadd.s32 4294967295, %s579_s14   ;;  %s387_s16 = sadd.s32 4294967294, %s579_s14   ;;  %s579_s14 = sphi %s610_s14, %s15_s14   ;;  %s575_s13 = sphi %s608_s13, %s748_s13   ;;  %s571_s12 = sphi %s606_s12, %s747_s12   ;;  %s567_s11 = sphi %s604_s11, %s746_s11   ;;  %s563_s10 = sphi %s602_s10, %s745_s10   ;;  %s559_s9 = sphi %s600_s9, %s744_s9  }
   0x5   : > { %s27_s17 = sadd.s32 1, %s575_s13  ;;  %s85_s18 = sadd.s32 1, %s567_s11 }
   0x6   : > { %p29_p0 = scmp.ge.s32.totalorder %s27_s17, 2  ;;  %p95_p1 = scmp.ne.s32.totalorder %s567_s11, %s563_s10 }
   0x7   : > { %p96_p2 = scmp.eq.s32.totalorder %s386_s15, 1  ;;  %p101_p3 = scmp.ne.s32.totalorder %s563_s10, %s559_s9 }
   0x8   : > { %s750_s17 = smov (%p29_p0, %s27_s17), 0  ;;  %p102_p5 = scmp.eq.s32.totalorder %s387_s16, 1 }
   0x9   : > { %p640_p4 = por %p96_p2, %p95_p1  ;;  %s80_s20 = ssub.s32 %s575_s13, %s750_s17 }
   0xa   : > { %p390_p6 = scmp.ge.s32.totalorder %s579_s14, 1  ;;  %p83_p7 = scmp.eq.s32.totalorder %s80_s20, 0 }
   0xb   : > { %p647_p8 = por %p102_p5, %p101_p3  ;;  %p134_p9 = scmp.lt.s32.totalorder %s579_s14, 3 }
   0xc   : > { %s653_s22 = scalar_select %p83_p7, %s567_s11, %s85_s18  }
   0xd   : > { %p135_p10 = pnand %p390_p6, %p134_p9 }
   0xe   : > { %p159_p11 = scmp.lt.s32.totalorder (!%p135_p10), %s571_s12, 1  ;;  %v208_v0 = vld [vmem:[%s740_s1] sm:$0xff] (!%p135_p10)  ;;  %v209_v1 = vld [vmem:[%s740_s1 + $0x8] sm:$0xff] (!%p135_p10)  ;;  %v210_v2 = vld [vmem:[%s740_s1 + $0x10] sm:$0xff] (!%p135_p10)  ;;  %v581_v3 = vmov (!%p135_p10), 0.0|0.0   ;;  %vm582_vm0 = vmmov (!%p135_p10), 0  }
   0xf   : > { %138 = sbr.rel (%p135_p10) target bundleno = 383 (0x17f), region = 28  ;;  %430 = vmatprep.subr.bf16.mxu0 (!%p135_p10), %v581_v3  ;;  %v431_v4 = vpack.c.bf16 (!%p135_p10), %v209_v1, %v208_v0  ;;  %v211_v5 = vld [vmem:[%s740_s1 + $0x18] sm:$0xff] (!%p135_p10)  ;;  %v583_v6 = vmov (!%p135_p10), 0.0   ;;  %v212_v8 = vld [vmem:[%s740_s1 + $0x20] sm:$0xff] (!%p135_p10)  ;;  %v213_v9 = vld [vmem:[%s740_s1 + $0x28] sm:$0xff] (!%p135_p10)  ;;  %vm221_vm1 = vcmask (!%p135_p10), 1040384  }
  0x10   : > { %427 = vmatprep.mubr.msk.f32.mxu0 (!%p135_p10), %vm582_vm0, %v583_v6  ;;  %v434_v7 = vpack.c.bf16 (!%p135_p10), %v211_v5, %v210_v2  ;;  %v437_v11 = vpack.c.bf16 (!%p135_p10), %v213_v9, %v212_v8  ;;  %v214_v12 = vld [vmem:[%s740_s1 + $0x30] sm:$0xff] (!%p135_p10)  ;;  %v215_v13 = vld [vmem:[%s740_s1 + $0x38] sm:$0xff] (!%p135_p10)  ;;  %v216_v17 = vld [vmem:[%s740_s1 + $0x40] sm:$0x1] (!%p135_p10)  ;;  %vm217_vm2 = vcmask (!%p135_p10), 531456   ;;  %s156_s28 = sand.u32 (!%p135_p10), 1, %s563_s10  }
  0x11   : > { %432 = vmatpush3.bf16.msra.mxu0 (!%p135_p10), %v431_v4  ;;  %v440_v15 = vpack.c.bf16 (!%p135_p10), %v215_v13, %v214_v12  ;;  %s391_s29 = sshll.u32 (!%p135_p10), %s156_s28, 2  ;;  %s396_s30 = sshll.u32 (!%p135_p10), %s571_s12, 6  ;;  %vm295_vm3 = vcmask (!%p135_p10), 519168  }
  0x12   : > { %433 = vmatprep.subr.bf16.mxu0 (!%p135_p10), %v581_v3  ;;  %s692_s7 = scalar_lea.hbm (!%p135_p10), %s741_s2, %s396_s30  ;;  %s298_s8 = scalar_lea.sflag (!%p135_p10), [#allocation3], %s156_s28 }
  0x15   : > { %435 = vmatpush3.bf16.msra.mxu0 (!%p135_p10), %v434_v7 }
  0x16   : > { %s160_s3 = scalar_select %p159_p11, %s571_s12, 1  ;;  %436 = vmatprep.subr.bf16.mxu0 %v581_v3 }
  0x17   : > { %s584_s12 = smov [#allocation2]  }
  0x18   : > { %s442_s4 = smul.u32 72, %s160_s3  ;;  %s158_s3 = scalar_lea.vmem [#allocation2], %s391_s29 }
  0x19   : > { %438 = vmatpush3.bf16.msra.mxu0 %v437_v11  ;;  %s505_s16 = sshll.u32 %s584_s12, 4  ;;  %s506_s16 = int_to_ptr.vmem [resolvable:$false] %s505_s16 }
  0x1a   : > { %s166_s18 = scalar_lea.vmem %s739_s0, %s442_s4  ;;  %439 = vmatprep.subr.bf16.mxu0 %v581_v3  ;;  %s312_s4 = sshll.u32 %s158_s3, 4  ;;  %s694_s4 = int_to_ptr.vmem [resolvable:$true] %s312_s4 }
  0x1b   : > { %v167_v10 = vld [vmem:[%s166_s18] sm:$0xff]  ;;  %v168_v14 = vld [vmem:[%s166_s18 + $0x8] sm:$0xff]  ;;  %v169_v16 = vld [vmem:[%s166_s18 + $0x10] sm:$0xff]  ;;  %s501_s15 = scalar_lea.vmem %s694_s4, 64  ;;  %p508_p1 = scmp.lt.s32.totalorder %s694_s4, %s506_s16 }
  0x1c   : > { %176 = vxpose.xlu0.b32.start [1/9] (short) (narrow) %v167_v10, 8  ;;  %v170_v18 = vld [vmem:[%s166_s18 + $0x18] sm:$0xff]  ;;  %v171_v19 = vld [vmem:[%s166_s18 + $0x20] sm:$0xff]  ;;  %v172_v20 = vld [vmem:[%s166_s18 + $0x28] sm:$0xff]  ;;  %p502_p12 = scmp.ne.s32.totalorder %s694_s4, %s501_s15 }
  0x1d   : > { %441 = vmatpush3.bf16.msra.mxu0 %v440_v15  ;;  %v173_v21 = vld [vmem:[%s166_s18 + $0x30] sm:$0xff]  ;;  %v174_v22 = vld [vmem:[%s166_s18 + $0x38] sm:$0xff]  ;;  %v175_v23 = vld [vmem:[%s166_s18 + $0x40] sm:$0x1]  ;;  %s507_s18 = scalar_lea.vmem %s506_s16, 128 }
  0x1e   : > { %425 = vmatprep.subr.mxu0 %v583_v6  ;;  %p503_p13 = pnand %p502_p12, %p640_p4  ;;  %p509_p2 = scmp.lt.s32.totalorder %s507_s18, %s501_s15 }
  0x20   : > { %177 = vxpose.xlu0.b32.cont [2/9] (short) (narrow) %v168_v14, 8  ;;  %p504_p0 = pneg %p503_p13  ;;  %p510_p3 = por %p509_p2, %p508_p1 }
  0x21   : > { %426 = vmatpush3.msk.msra.mxu0 %vm221_vm1, %v216_v17 }
  0x22   : > { %p511_p5 = pnand %p510_p3, %p504_p0 }
  0x24   : > { %178 = vxpose.xlu0.b32.cont [3/9] (short) (narrow) %v169_v16, 8 }
  0x28   : > { %179 = vxpose.xlu0.b32.cont [4/9] (short) (narrow) %v170_v18, 8 }
  0x2c   : > { %180 = vxpose.xlu0.b32.cont [5/9] (short) (narrow) %v171_v19, 8 }
  0x30   : > { %181 = vxpose.xlu0.b32.cont [6/9] (short) (narrow) %v172_v20, 8 }
  0x34   : > { %182 = vxpose.xlu0.b32.cont [7/9] (short) (narrow) %v173_v21, 8 }
  0x38   : > { %183 = vxpose.xlu0.b32.cont [8/9] (short) (narrow) %v174_v22, 8 }
  0x3c   : > { %184 = vxpose.xlu0.b32.end [9/9] (short) (narrow) %v175_v23, 8 }
  0x9c   : > { %v192_v24 = vpop.trf.xlu0 }
  0x9d   : > { %428 = vmatmul.mubr.msk.f32.vlgmr.msra.gmra.mrb[0].mxu0 %vm217_vm2, %v192_v24 }
 0x170   : > { %v291_v25 = vpop.f32.mrb[0].mxu0 }
 0x171   : > { %296 = vst.msk [vmem:[%s158_s3] sm:$0xf] %vm295_vm3, %v291_v25  ;;  %v429_v26 = vpop.f32.mrb[1].mxu0 }
 0x172   : > { %514 = shalt.err (!%p511_p5)
}
 0x173   : > { %s515_s20 = scalar_lea.hbm %s692_s7, 64  ;;  %s519_s25 = scalar_lea.hbm %s741_s2, 128 }
 0x174   : > { %p516_p6 = scmp.ne.s32.totalorder %s692_s7, %s515_s20  ;;  %p520_p10 = scmp.lt.u32.totalorder %s692_s7, %s741_s2 }
 0x175   : > { %p521_p11 = scmp.lt.u32.totalorder %s519_s25, %s515_s20  ;;  %p523_p13 = scmp.lt.u32.totalorder %s515_s20, %s692_s7 }
 0x176   : > { %p517_p7 = pnand %p516_p6, %p640_p4 }
 0x177   : > { %p522_p12 = por %p521_p11, %p520_p10 }
 0x178   : > { %p518_p9 = pneg %p517_p7 }
 0x179   : > { %p524_p0 = por %p523_p13, %p522_p12 }
 0x17b   : > { %p525_p1 = pnand %p524_p0, %p518_p9 }
 0x17d   : > { %528 = shalt.err (!%p525_p1)
}
 0x17e   : > { %443 = dma.vmem_to_hbm [thread:$0]  (%p640_p4), %s694_s4, 64, %s692_s7, %s298_s8  }
 0x17f PF: > { %p449_p2 = scmp.ge.s32.totalorder %s579_s14, 2  ;;  %s324_s28 = sand.u32 1, %s559_s9  }
 0x180   : > { %s325_s29 = scalar_lea.sflag [#allocation3], %s324_s28 }
 0x181   : > { %p446_p3 = pnand %p449_p2, %p647_p8 }
 0x183   : > { %554 = dma.done.wait (!%p446_p3), %s325_s29, 64  }
 0x184   : > { %556 = vsyncadd (!%p446_p3), %s325_s29, 4294967232  ;;  %s15_s14 = sadd.s32 1, %s579_s14   ;;  %s744_s9 = smov %s563_s10 }
 0x185   : > { %p12_p5 = scmp.ge.s32.totalorder %s15_s14, 4   ;;  %s745_s10 = smov %s567_s11 }
 0x186   : > { %s746_s11 = smov %s653_s22  ;;  %s747_s12 = smov %s575_s13 }
 0x187   : > { %s748_s13 = smov %s750_s17  ;;  %14 = sbr.rel (!%p12_p5) target bundleno = 4 (0x4), region = 63 }
 0x18e   :  { %330 = vsyncpa [#allocation3], 1 }
 0x18f   :  { %332 = vsyncpa [#allocation3 + $0x1], 1 }

</bundles_post_ra>
